<compile_context>
chip_gen: v6e
topology: v6e:2x2x1
jax: 0.10.0
libtpu: 0.0.40
codegen_flags: <defaults>
</compile_context>

<pallas_src>
from functools import partial

import jax
import jax.numpy as jnp
from jax.experimental import pallas as pl
from jax.experimental.pallas import tpu as pltpu
import numpy as np

LANE = 128     # TPU vreg lane width
SUBLANE = 8    # TPU vreg sublane count
MAX_TB = 2048  # cap on batch-tile rows


def actor_kernel(obs_ref, w1_ref, b1_ref, w2_ref, b2_ref, w3_ref, b3_ref,
                 out_ref):
    """One batch-tile of the MLP forward; all weights fully resident in VMEM."""
    x = obs_ref[...]                                            # (TB, F) f32

    # Layer 1: Linear + ReLU (MXU matmul, f32 accumulate; bias/ReLU on VPU).
    h1 = jnp.dot(x, w1_ref[...], preferred_element_type=jnp.float32)
    h1 = jnp.maximum(h1 + b1_ref[...], 0.0)                     # (TB, H_pad)

    # Layer 2: Linear + ReLU.
    h2 = jnp.dot(h1, w2_ref[...], preferred_element_type=jnp.float32)
    h2 = jnp.maximum(h2 + b2_ref[...], 0.0)                     # (TB, H_pad)

    # Layer 3: Linear + Tanh (tanh on EUP).  Output tile is only A_pad (=8)
    # lanes wide, so the HBM writeback is not amplified to 128 lanes.
    a = jnp.dot(h2, w3_ref[...], preferred_element_type=jnp.float32)
    out_ref[...] = jnp.tanh(a + b3_ref[...]).astype(out_ref.dtype)


def prepare_actor_params(w1, b1, w2, b2, w3, b3):
    """Pad parameters once (outside the hot path).

    Hidden dim -> 128 lanes, action dim -> 8 lanes.  All padding is zeros,
    which is numerically exact for this ReLU/tanh MLP.
    Weights are (in, out); biases are (1, out).
    """
    F, H = w1.shape
    A = w3.shape[1]
    H_pad = pl.cdiv(H, LANE) * LANE
    A_pad = pl.cdiv(A, SUBLANE) * SUBLANE

    def pad2(x, rows, cols):
        r, c = x.shape
        return jnp.zeros((rows, cols), jnp.float32).at[:r, :c].set(
            x.astype(jnp.float32))

    return (
        pad2(w1, F, H_pad), pad2(b1, 1, H_pad),
        pad2(w2, H_pad, H_pad), pad2(b2, 1, H_pad),
        pad2(w3, H_pad, A_pad), pad2(b3, 1, A_pad),
    )


def _batch_tiling(batch):
    """Pick the batch tile: ~half the (8-aligned) batch so grid == 2
    (one tile per v7x TensorCore), capped at MAX_TB rows."""
    b8 = ((batch + SUBLANE - 1) // SUBLANE) * SUBLANE
    tb = ((b8 + 2 * SUBLANE - 1) // (2 * SUBLANE)) * SUBLANE  # ceil(b8/2), 8-aligned
    tb = max(SUBLANE, min(tb, MAX_TB))
    grid = pl.cdiv(b8, tb)
    return tb, tb * grid


@partial(jax.jit, static_argnames=("n_actions",))
def actor_forward(obs, params, *, n_actions):
    """Runs the Actor MLP on pre-padded params (see prepare_actor_params)."""
    w1p, b1p, w2p, b2p, w3p, b3p = params
    B, F = obs.shape
    H_pad = w1p.shape[1]
    A_pad = w3p.shape[1]

    TB, B_pad = _batch_tiling(B)
    if B_pad != B:
        obs = jnp.pad(obs, ((0, B_pad - B), (0, 0)))
    grid = (B_pad // TB,)

    # Weights/biases: same (0, 0) block every grid step -> stay resident in VMEM.
    resident = lambda shape: pl.BlockSpec(shape, lambda i: (0, 0))

    out_padded = pl.pallas_call(
        actor_kernel,
        out_shape=jax.ShapeDtypeStruct((B_pad, A_pad), jnp.float32),
        grid_spec=pltpu.PrefetchScalarGridSpec(
            num_scalar_prefetch=0,
            grid=grid,
            in_specs=[
                pl.BlockSpec((TB, F), lambda i: (i, 0)),       # obs: row-tiled
                resident((F, H_pad)), resident((1, H_pad)),    # w1, b1
                resident((H_pad, H_pad)), resident((1, H_pad)),  # w2, b2
                resident((H_pad, A_pad)), resident((1, A_pad)),  # w3, b3
            ],
            out_specs=pl.BlockSpec((TB, A_pad), lambda i: (i, 0)),
        ),
        compiler_params=pltpu.CompilerParams(
            dimension_semantics=("parallel",),  # v7x: one batch tile per TC
        ),
    )(obs, w1p, b1p, w2p, b2p, w3p, b3p)

    # Strip batch and lane padding; fuses with the custom call under jit.
    return out_padded[:B, :n_actions]


def xavier_uniform(key, fan_in, fan_out, gain):
    """Matches torch.nn.init.xavier_uniform_ with given gain; returns (in, out)."""
    bound = gain * np.sqrt(6.0 / (fan_in + fan_out))
    return jax.random.uniform(key, (fan_in, fan_out), jnp.float32,
                              minval=-bound, maxval=bound)


def linear_bias(key, fan_in, fan_out):
    """Matches PyTorch Linear default bias init: U(-1/sqrt(fan_in), 1/sqrt(fan_in))."""
    bound = 1.0 / np.sqrt(fan_in)
    return jax.random.uniform(key, (1, fan_out), jnp.float32,
                              minval=-bound, maxval=bound)


if __name__ == "__main__":
    # Shapes implied by the module: flat observation -> action vector.
    batch = 256
    n_features = 16
    hidden_size = 32
    n_actions = 4
    max_action = 2.0  # unused in forward(), kept for parity with __init__

    key = jax.random.PRNGKey(0)
    k_obs, k_w1, k_b1, k_w2, k_b2, k_w3, k_b3 = jax.random.split(key, 7)

    gain_relu = float(np.sqrt(2.0))  # nn.init.calculate_gain('relu')

    obs = jax.random.normal(k_obs, (batch, n_features), jnp.float32)

    w1 = xavier_uniform(k_w1, n_features, hidden_size, gain_relu)
    b1 = linear_bias(k_b1, n_features, hidden_size)
    w2 = xavier_uniform(k_w2, hidden_size, hidden_size, gain_relu)
    b2 = linear_bias(k_b2, hidden_size, hidden_size)
    w3 = xavier_uniform(k_w3, hidden_size, n_actions, gain_relu)
    b3 = linear_bias(k_b3, hidden_size, n_actions)

    # Pad parameters once (not per forward call).
    params = prepare_actor_params(w1, b1, w2, b2, w3, b3)

    action = actor_forward(obs, params, n_actions=n_actions)
    action = jax.block_until_ready(action)

    # Reference check in plain JAX (unpadded weights).
    h1 = jnp.maximum(obs @ w1 + b1, 0.0)
    h2 = jnp.maximum(h1 @ w2 + b2, 0.0)
    ref = jnp.tanh(h2 @ w3 + b3)
    np.testing.assert_allclose(np.asarray(action), np.asarray(ref),
                               rtol=1e-5, atol=1e-5)

    assert action.shape == (batch, n_actions)
    assert bool(jnp.all(jnp.abs(action) <= 1.0))

    # Also verify small / non-tile-aligned batch paths (padding branch).
    small = actor_forward(obs[:8], params, n_actions=n_actions)
    small = jax.block_until_ready(small)
    np.testing.assert_allclose(np.asarray(small), np.asarray(ref[:8]),
                               rtol=1e-5, atol=1e-5)

    tiny = actor_forward(obs[:5], params, n_actions=n_actions)
    tiny = jax.block_until_ready(tiny)
    np.testing.assert_allclose(np.asarray(tiny), np.asarray(ref[:5]),
                               rtol=1e-5, atol=1e-5)

    print("KERNEL_OK")
</pallas_src>

<mosaic_0001>
module attributes {stable_mosaic.version = 11 : i64} {
  func.func @actor_kernel(%arg0: i32, %arg1: memref<128x16xf32, #tpu.memory_space<vmem>>, %arg2: memref<16x128xf32, #tpu.memory_space<vmem>>, %arg3: memref<1x128xf32, #tpu.memory_space<vmem>>, %arg4: memref<128x128xf32, #tpu.memory_space<vmem>>, %arg5: memref<1x128xf32, #tpu.memory_space<vmem>>, %arg6: memref<128x8xf32, #tpu.memory_space<vmem>>, %arg7: memref<1x8xf32, #tpu.memory_space<vmem>>, %arg8: memref<128x8xf32, #tpu.memory_space<vmem>>) attributes {dimension_semantics = [#tpu.dimension_semantics<parallel>], iteration_bounds = array<i64: 2>, scalar_prefetch = 0 : i64, scratch_operands = 0 : i64, tpu.core_type = #tpu.core_type<tc>, window_params = [{transform_indices = @transform_0, window_bounds = array<i64: 128, 16>}, {pipeline_mode = #tpu.pipeline_mode<synchronous>, transform_indices = @transform_1, window_bounds = array<i64: 16, 128>}, {pipeline_mode = #tpu.pipeline_mode<synchronous>, transform_indices = @transform_2, window_bounds = array<i64: 1, 128>}, {pipeline_mode = #tpu.pipeline_mode<synchronous>, transform_indices = @transform_3, window_bounds = array<i64: 128, 128>}, {pipeline_mode = #tpu.pipeline_mode<synchronous>, transform_indices = @transform_4, window_bounds = array<i64: 1, 128>}, {pipeline_mode = #tpu.pipeline_mode<synchronous>, transform_indices = @transform_5, window_bounds = array<i64: 128, 8>}, {pipeline_mode = #tpu.pipeline_mode<synchronous>, transform_indices = @transform_6, window_bounds = array<i64: 1, 8>}, {transform_indices = @transform_7, window_bounds = array<i64: 128, 8>}]} {
    %c0 = arith.constant 0 : index
    %c0_0 = arith.constant 0 : index
    %0 = vector.load %arg1[%c0, %c0_0] : memref<128x16xf32, #tpu.memory_space<vmem>>, vector<128x16xf32>
    %c0_1 = arith.constant 0 : index
    %c0_2 = arith.constant 0 : index
    %1 = vector.load %arg2[%c0_1, %c0_2] : memref<16x128xf32, #tpu.memory_space<vmem>>, vector<16x128xf32>
    %cst = arith.constant dense<0.000000e+00> : vector<128x128xf32>
    %2 = tpu.matmul %0, %1, %cst {dimension_numbers = #tpu.dot_dimension_numbers<[1], [0], [0], [1], [0, 0, 1, 1], [], []>} : vector<128x16xf32>, vector<16x128xf32>, vector<128x128xf32> -> vector<128x128xf32>
    %c0_3 = arith.constant 0 : index
    %c0_4 = arith.constant 0 : index
    %3 = vector.load %arg3[%c0_3, %c0_4] : memref<1x128xf32, #tpu.memory_space<vmem>>, vector<1x128xf32>
    %4 = vector.broadcast %3 : vector<1x128xf32> to vector<128x128xf32>
    %5 = arith.addf %2, %4 : vector<128x128xf32>
    %cst_5 = arith.constant 0.000000e+00 : f32
    %6 = vector.broadcast %cst_5 : f32 to vector<128x128xf32>
    %7 = arith.maximumf %5, %6 : vector<128x128xf32>
    %c0_6 = arith.constant 0 : index
    %c0_7 = arith.constant 0 : index
    %8 = vector.load %arg4[%c0_6, %c0_7] : memref<128x128xf32, #tpu.memory_space<vmem>>, vector<128x128xf32>
    %cst_8 = arith.constant dense<0.000000e+00> : vector<128x128xf32>
    %9 = tpu.matmul %7, %8, %cst_8 {dimension_numbers = #tpu.dot_dimension_numbers<[1], [0], [0], [1], [0, 0, 1, 1], [], []>} : vector<128x128xf32>, vector<128x128xf32>, vector<128x128xf32> -> vector<128x128xf32>
    %c0_9 = arith.constant 0 : index
    %c0_10 = arith.constant 0 : index
    %10 = vector.load %arg5[%c0_9, %c0_10] : memref<1x128xf32, #tpu.memory_space<vmem>>, vector<1x128xf32>
    %11 = vector.broadcast %10 : vector<1x128xf32> to vector<128x128xf32>
    %12 = arith.addf %9, %11 : vector<128x128xf32>
    %cst_11 = arith.constant 0.000000e+00 : f32
    %13 = vector.broadcast %cst_11 : f32 to vector<128x128xf32>
    %14 = arith.maximumf %12, %13 : vector<128x128xf32>
    %c0_12 = arith.constant 0 : index
    %c0_13 = arith.constant 0 : index
    %15 = vector.load %arg6[%c0_12, %c0_13] : memref<128x8xf32, #tpu.memory_space<vmem>>, vector<128x8xf32>
    %cst_14 = arith.constant dense<0.000000e+00> : vector<128x8xf32>
    %16 = tpu.matmul %14, %15, %cst_14 {dimension_numbers = #tpu.dot_dimension_numbers<[1], [0], [0], [1], [0, 0, 1, 1], [], []>} : vector<128x128xf32>, vector<128x8xf32>, vector<128x8xf32> -> vector<128x8xf32>
    %c0_15 = arith.constant 0 : index
    %c0_16 = arith.constant 0 : index
    %17 = vector.load %arg7[%c0_15, %c0_16] : memref<1x8xf32, #tpu.memory_space<vmem>>, vector<1x8xf32>
    %18 = vector.broadcast %17 : vector<1x8xf32> to vector<128x8xf32>
    %19 = arith.addf %16, %18 : vector<128x8xf32>
    %20 = math.tanh %19 : vector<128x8xf32>
    %c0_17 = arith.constant 0 : index
    %c0_18 = arith.constant 0 : index
    %21 = vector.load %arg8[%c0_17, %c0_18] : memref<128x8xf32, #tpu.memory_space<vmem>>, vector<128x8xf32>
    tpu.vector_store %arg8[%c0_17, %c0_18], %20 {strides = array<i32>} : memref<128x8xf32, #tpu.memory_space<vmem>>, vector<128x8xf32>,
    return
  }
  func.func @transform_0(%arg0: i32) -> (i32, i32) {
    %c0_i32 = arith.constant 0 : i32
    %c0_i32_0 = arith.constant 0 : i32
    return %arg0, %c0_i32 : i32, i32
  }
  func.func @transform_1(%arg0: i32) -> (i32, i32) {
    %c0_i32 = arith.constant 0 : i32
    %c0_i32_0 = arith.constant 0 : i32
    %c0_i32_1 = arith.constant 0 : i32
    return %c0_i32, %c0_i32_0 : i32, i32
  }
  func.func @transform_2(%arg0: i32) -> (i32, i32) {
    %c0_i32 = arith.constant 0 : i32
    %c0_i32_0 = arith.constant 0 : i32
    %c0_i32_1 = arith.constant 0 : i32
    return %c0_i32, %c0_i32_0 : i32, i32
  }
  func.func @transform_3(%arg0: i32) -> (i32, i32) {
    %c0_i32 = arith.constant 0 : i32
    %c0_i32_0 = arith.constant 0 : i32
    %c0_i32_1 = arith.constant 0 : i32
    return %c0_i32, %c0_i32_0 : i32, i32
  }
  func.func @transform_4(%arg0: i32) -> (i32, i32) {
    %c0_i32 = arith.constant 0 : i32
    %c0_i32_0 = arith.constant 0 : i32
    %c0_i32_1 = arith.constant 0 : i32
    return %c0_i32, %c0_i32_0 : i32, i32
  }
  func.func @transform_5(%arg0: i32) -> (i32, i32) {
    %c0_i32 = arith.constant 0 : i32
    %c0_i32_0 = arith.constant 0 : i32
    %c0_i32_1 = arith.constant 0 : i32
    return %c0_i32, %c0_i32_0 : i32, i32
  }
  func.func @transform_6(%arg0: i32) -> (i32, i32) {
    %c0_i32 = arith.constant 0 : i32
    %c0_i32_0 = arith.constant 0 : i32
    %c0_i32_1 = arith.constant 0 : i32
    return %c0_i32, %c0_i32_0 : i32, i32
  }
  func.func @transform_7(%arg0: i32) -> (i32, i32) {
    %c0_i32 = arith.constant 0 : i32
    %c0_i32_0 = arith.constant 0 : i32
    return %arg0, %c0_i32 : i32, i32
  }
}

</mosaic_0001>

<bundles_post_ra>
// kernel: actor_forward.1
= control target key start
LH: loop header
LB: loop body
LE: loop exit
PB: predicated region body
PF: predicated region fallthrough
CT: control target
= control target key end

     0   :  { %s1298_s24 = smov 0   ;;  %s1519_s0 = inlined_call_operand.vmem [shape: f32[256,16], index: 0, kind: input, shape index: {}]   ;;  %s1520_s1 = inlined_call_operand.vmem [shape: f32[16,128], index: 1, kind: input, shape index: {}]   ;;  %s1521_s2 = inlined_call_operand.vmem [shape: f32[1,128], index: 2, kind: input, shape index: {}]   ;;  %s1522_s3 = inlined_call_operand.vmem [shape: f32[128,128], index: 3, kind: input, shape index: {}]   ;;  %s1523_s4 = inlined_call_operand.vmem [shape: f32[1,128], index: 4, kind: input, shape index: {}]   ;;  %s1524_s5 = inlined_call_operand.vmem [shape: f32[128,8], index: 5, kind: input, shape index: {}]   ;;  %s1525_s6 = inlined_call_operand.vmem [shape: f32[1,8], index: 6, kind: input, shape index: {}]   ;;  %s1526_s7 = inlined_call_operand.vmem [shape: f32[256,8], index: 7, kind: output, shape index: {}]  }
   0x1 LB: > { %s958_s25 = sadd.s32 4294967295, %s1256_s24   ;;  %p962_p0 = scmp.ge.s32.totalorder %s1256_s24, 1  ;;  %s1256_s24 = sphi %s1298_s24, %s17_s24  }
   0x2   : > { %p238_p1 = scmp.lt.s32.totalorder %s1256_s24, 3 }
   0x4   : > { %p239_p2 = pnand %p962_p0, %p238_p1 }
   0x5   : > { %s963_s30 = sshll.u32 (!%p239_p2), %s958_s25, 4 }
   0x6   : > { %242 = sbr.rel (%p239_p2) target bundleno = 657 (0x291), region = 48  ;;  %p271_p3 = scmp.lt.s32.totalorder (!%p239_p2), %s963_s30, 31 }
   0xb   : > { %v299_v0 = vld [vmem:[%s1520_s1 + $0x8] sm:$0xff]  ;;  %v298_v1 = vld [vmem:[%s1520_s1] sm:$0xff]  ;;  %v532_v2 = vld [vmem:[%s1522_s3 + $0x78] sm:$0xff]  ;;  %s1528_s30 = smov (!%p271_p3, %s963_s30), 31  ;;  %vm307_vm0 = vcmask 130048   ;;  %vm885_vm1 = vcmask 64512  }
   0xc   : > { %1070 = vmatprep.subr.mxu0 %v299_v0  ;;  %1098 = vmatprep.subr.mxu1 %v532_v2  ;;  %v531_v3 = vld [vmem:[%s1522_s3 + $0x70] sm:$0xff]  ;;  %v530_v4 = vld [vmem:[%s1522_s3 + $0x68] sm:$0xff]  ;;  %v529_v5 = vld [vmem:[%s1522_s3 + $0x60] sm:$0xff]  ;;  %s964_s16 = sshll.u32 %s1528_s30, 3 }
   0xd   : > { %1071 = vmatpush3.msra.mxu0 %v299_v0  ;;  %1099 = vmatpush3.msra.mxu1 %v532_v2  ;;  %s1332_s19 = scalar_lea.vmem %s1519_s0, %s964_s16  ;;  %v528_v6 = vld [vmem:[%s1522_s3 + $0x58] sm:$0xff]  ;;  %v527_v10 = vld [vmem:[%s1522_s3 + $0x50] sm:$0xff]  ;;  %v526_v12 = vld [vmem:[%s1522_s3 + $0x48] sm:$0xff]  ;;  %s1473_s25 = scalar_lea.vmem %s1526_s7, %s964_s16 }
   0xe   : > { %1072 = vmatprep.subr.mxu0 %v298_v1  ;;  %1100 = vmatprep.subr.mxu1 %v531_v3  ;;  %v282_v7 = vld [vmem:[%s1332_s19] sm:$0xff]  ;;  %v283_v8 = vld [vmem:[%s1332_s19 + $0x8] sm:$0xff]  ;;  %v284_v9 = vld [vmem:[%s1332_s19 + $0x10] sm:$0xff] }
   0xf   : > { %1073 = vmatpush3.msra.mxu0 %v298_v1  ;;  %1101 = vmatpush3.msra.mxu1 %v531_v3  ;;  %v285_v11 = vld [vmem:[%s1332_s19 + $0x18] sm:$0xff]  ;;  %v286_v13 = vld [vmem:[%s1332_s19 + $0x20] sm:$0xff]  ;;  %v287_v15 = vld [vmem:[%s1332_s19 + $0x28] sm:$0xff] }
  0x10   : > { %1102 = vmatprep.subr.mxu1 %v530_v4  ;;  %1074 = vmatprep.mubr.msk.f32.mxu0 %vm307_vm0, %v282_v7  ;;  %v525_v14 = vld [vmem:[%s1522_s3 + $0x40] sm:$0xff]  ;;  %v524_v16 = vld [vmem:[%s1522_s3 + $0x38] sm:$0xff]  ;;  %v288_v17 = vld [vmem:[%s1332_s19 + $0x30] sm:$0xff] }
  0x11   : > { %1103 = vmatpush3.msra.mxu1 %v530_v4  ;;  %1075 = vmatmul.mubr.msk.f32.vlgmr.msra.gmra.mxu0 %vm307_vm0, %v283_v8  ;;  %v523_v18 = vld [vmem:[%s1522_s3 + $0x30] sm:$0xff]  ;;  %v289_v19 = vld [vmem:[%s1332_s19 + $0x38] sm:$0xff]  ;;  %v522_v20 = vld [vmem:[%s1522_s3 + $0x28] sm:$0xff] }
  0x12   : > { %1104 = vmatprep.subr.mxu1 %v529_v5  ;;  %1077 = vmatprep.mubr.msk.f32.mxu0 %vm307_vm0, %v284_v9  ;;  %v290_v21 = vld [vmem:[%s1332_s19 + $0x40] sm:$0xff]  ;;  %v291_v23 = vld [vmem:[%s1332_s19 + $0x48] sm:$0xff]  ;;  %v292_v24 = vld [vmem:[%s1332_s19 + $0x50] sm:$0xff] }
  0x13   : > { %1105 = vmatpush3.msra.mxu1 %v529_v5  ;;  %v521_v22 = vld [vmem:[%s1522_s3 + $0x20] sm:$0xff]  ;;  %v293_v25 = vld [vmem:[%s1332_s19 + $0x58] sm:$0xff]  ;;  %v295_v27 = vld [vmem:[%s1332_s19 + $0x68] sm:$0xff] }
  0x14   : > { %1106 = vmatprep.subr.mxu1 %v528_v6  ;;  %v294_v26 = vld [vmem:[%s1332_s19 + $0x60] sm:$0xff]  ;;  %v296_v28 = vld [vmem:[%s1332_s19 + $0x70] sm:$0xff]  ;;  %v297_v29 = vld [vmem:[%s1332_s19 + $0x78] sm:$0xff] }
  0x15   : > { %1107 = vmatpush3.msra.mxu1 %v528_v6  ;;  %1078 = vmatmul.mubr.msk.f32.gmra.mxu0 %vm307_vm0, %v285_v11  ;;  %v520_v30 = vld [vmem:[%s1522_s3 + $0x18] sm:$0xff]  ;;  %v519_v31 = vld [vmem:[%s1522_s3 + $0x10] sm:$0xff]  ;;  %v518_v32 = vld [vmem:[%s1522_s3 + $0x8] sm:$0xff] }
  0x16   : > { %1108 = vmatprep.subr.mxu1 %v527_v10  ;;  %1080 = vmatprep.mubr.msk.f32.mxu0 %vm307_vm0, %v286_v13  ;;  %v517_v33 = vld [vmem:[%s1522_s3] sm:$0xff]  ;;  %v716_v34 = vld [vmem:[%s1524_s5 + $0x78] sm:$0xff]  ;;  %v715_v35 = vld [vmem:[%s1524_s5 + $0x70] sm:$0xff] }
  0x17   : > { %1109 = vmatpush3.msra.mxu1 %v527_v10  ;;  %1154 = vmatprep.subr.mxu0 %v716_v34  ;;  %v714_v36 = vld [vmem:[%s1524_s5 + $0x68] sm:$0xff]  ;;  %v713_v37 = vld [vmem:[%s1524_s5 + $0x60] sm:$0xff]  ;;  %v712_v38 = vld [vmem:[%s1524_s5 + $0x58] sm:$0xff] }
  0x18   : > { %1110 = vmatprep.subr.mxu1 %v526_v12  ;;  %1155 = vmatpush3.msra.mxu0 %v716_v34  ;;  %v711_v39 = vld [vmem:[%s1524_s5 + $0x50] sm:$0xff]  ;;  %v710_v40 = vld [vmem:[%s1524_s5 + $0x48] sm:$0xff]  ;;  %v709_v41 = vld [vmem:[%s1524_s5 + $0x40] sm:$0xff] }
  0x19   : > { %1111 = vmatpush3.msra.mxu1 %v526_v12  ;;  %1081 = vmatmul.mubr.msk.f32.gmra.mxu0 %vm307_vm0, %v287_v15  ;;  %v708_v42 = vld [vmem:[%s1524_s5 + $0x38] sm:$0xff]  ;;  %v707_v43 = vld [vmem:[%s1524_s5 + $0x30] sm:$0xff]  ;;  %v706_v44 = vld [vmem:[%s1524_s5 + $0x28] sm:$0xff] }
  0x1a   : > { %1112 = vmatprep.subr.mxu1 %v525_v14  ;;  %1083 = vmatprep.mubr.msk.f32.mxu0 %vm307_vm0, %v288_v17  ;;  %v705_v45 = vld [vmem:[%s1524_s5 + $0x20] sm:$0xff]  ;;  %v704_v46 = vld [vmem:[%s1524_s5 + $0x18] sm:$0xff] }
  0x1b   : > { %1113 = vmatpush3.msra.mxu1 %v525_v14  ;;  %1156 = vmatprep.subr.mxu0 %v715_v35  ;;  %v967_v47 = vld [vmem:[%s1521_s2] ss:$0 sm:$0xff] }
  0x1c   : > { %1114 = vmatprep.subr.mxu1 %v524_v16  ;;  %1157 = vmatpush3.msra.mxu0 %v715_v35  ;;  %v701_v34 = vld [vmem:[%s1524_s5] sm:$0xff] }
  0x1d   : > { %1115 = vmatpush3.msra.mxu1 %v524_v16  ;;  %1084 = vmatmul.mubr.msk.f32.gmra.mxu0 %vm307_vm0, %v289_v19  ;;  %v984_v35 = vld [vmem:[%s1523_s4] ss:$0 sm:$0xff] }
  0x1e   : > { %1116 = vmatprep.subr.mxu1 %v523_v18  ;;  %1086 = vmatprep.mubr.msk.f32.mxu0 %vm307_vm0, %v290_v21 }
  0x1f   : > { %1117 = vmatpush3.msra.mxu1 %v523_v18  ;;  %1158 = vmatprep.subr.mxu0 %v714_v36 }
  0x20   : > { %1118 = vmatprep.subr.mxu1 %v522_v20  ;;  %1159 = vmatpush3.msra.mxu0 %v714_v36 }
  0x21   : > { %1119 = vmatpush3.msra.mxu1 %v522_v20  ;;  %1087 = vmatmul.mubr.msk.f32.gmra.mxu0 %vm307_vm0, %v291_v23 }
  0x22   : > { %1120 = vmatprep.subr.mxu1 %v521_v22  ;;  %1089 = vmatprep.mubr.msk.f32.mxu0 %vm307_vm0, %v292_v24 }
  0x23   : > { %1121 = vmatpush3.msra.mxu1 %v521_v22  ;;  %1160 = vmatprep.subr.mxu0 %v713_v37 }
  0x24   : > { %1122 = vmatprep.subr.mxu1 %v520_v30  ;;  %1161 = vmatpush3.msra.mxu0 %v713_v37 }
  0x25   : > { %1090 = vmatmul.mubr.msk.f32.gmra.mxu0 %vm307_vm0, %v293_v25  ;;  %1123 = vmatpush3.msra.mxu1 %v520_v30 }
  0x26   : > { %1092 = vmatprep.mubr.msk.f32.mxu0 %vm307_vm0, %v294_v26  ;;  %1124 = vmatprep.subr.mxu1 %v519_v31 }
  0x27   : > { %1125 = vmatpush3.msra.mxu1 %v519_v31  ;;  %1162 = vmatprep.subr.mxu0 %v712_v38 }
  0x28   : > { %1126 = vmatprep.subr.mxu1 %v518_v32  ;;  %1163 = vmatpush3.msra.mxu0 %v712_v38 }
  0x29   : > { %1093 = vmatmul.mubr.msk.f32.gmra.mxu0 %vm307_vm0, %v295_v27  ;;  %1127 = vmatpush3.msra.mxu1 %v518_v32  ;;  %v703_v32 = vld [vmem:[%s1524_s5 + $0x10] sm:$0xff] }
  0x2a   : > { %1095 = vmatprep.mubr.msk.f32.mxu0 %vm307_vm0, %v296_v28  ;;  %1128 = vmatprep.subr.mxu1 %v517_v33 }
  0x2b   : > { %1129 = vmatpush3.msra.mxu1 %v517_v33  ;;  %1164 = vmatprep.subr.mxu0 %v711_v39  ;;  %v702_v33 = vld [vmem:[%s1524_s5 + $0x8] sm:$0xff] }
  0x2c   : > { %1165 = vmatpush3.msra.mxu0 %v711_v39 }
  0x2d   : > { %1096 = vmatmul.mubr.msk.f32.gmra.mxu0 %vm307_vm0, %v297_v29  ;;  %1166 = vmatprep.subr.mxu0 %v710_v40 }
  0x2e   : > { %1167 = vmatpush3.msra.mxu0 %v710_v40 }
  0x2f   : > { %1168 = vmatprep.subr.mxu0 %v709_v41 }
  0x30   : > { %1169 = vmatpush3.msra.mxu0 %v709_v41 }
  0x31   : > { %1170 = vmatprep.subr.mxu0 %v708_v42 }
  0x32   : > { %1171 = vmatpush3.msra.mxu0 %v708_v42 }
  0x33   : > { %1172 = vmatprep.subr.mxu0 %v707_v43 }
  0x34   : > { %1173 = vmatpush3.msra.mxu0 %v707_v43 }
  0x35   : > { %1174 = vmatprep.subr.mxu0 %v706_v44 }
  0x36   : > { %1175 = vmatpush3.msra.mxu0 %v706_v44 }
  0x37   : > { %1176 = vmatprep.subr.mxu0 %v705_v45 }
  0x38   : > { %1177 = vmatpush3.msra.mxu0 %v705_v45 }
  0x39   : > { %1178 = vmatprep.subr.mxu0 %v704_v46 }
  0x3a   : > { %1179 = vmatpush3.msra.mxu0 %v704_v46 }
  0x3b   : > { %1180 = vmatprep.subr.mxu0 %v703_v32 }
  0x3c   : > { %1181 = vmatpush3.msra.mxu0 %v703_v32 }
  0x3d   : > { %1182 = vmatprep.subr.mxu0 %v702_v33 }
  0x3e   : > { %1183 = vmatpush3.msra.mxu0 %v702_v33 }
  0x3f   : > { %1184 = vmatprep.subr.mxu0 %v701_v34 }
  0x40   : > { %1185 = vmatpush3.msra.mxu0 %v701_v34 }
  0xd1   : > { %v1076_v48 = vpop.f32.mrf.mxu0 }
  0xd2   : > { %v428_v49 = vadd.f32 %v1076_v48, %v967_v47 }
  0xd3   : > { %v422_v50 = vpop.f32.mrf.mxu0 }
  0xd4   : > { %v423_v51 = vadd.f32 %v967_v47, %v422_v50  ;;  %v502_v54 = vmax.f32 %v428_v49, 0.0 }
  0xd5   : > { %v1079_v52 = vpop.f32.mrf.mxu0 }
  0xd6   : > { %v501_v53 = vmax.f32 %v423_v51, 0.0  ;;  %v438_v55 = vadd.f32 %v1079_v52, %v967_v47 }
  0xd7   : > { %v432_v56 = vpop.f32.mrf.mxu0 }
  0xd8   : > { %v433_v57 = vadd.f32 %v967_v47, %v432_v56  ;;  %1130 = vmatprep.mubr.f32.mxu1 %v501_v53  ;;  %v504_v60 = vmax.f32 %v438_v55, 0.0 }
  0xd9   : > { %v1082_v58 = vpop.f32.mrf.mxu0  ;;  %1131 = vmatmul.mubr.f32.vlgmr.msra.gmra.mxu1 %v502_v54 }
  0xda   : > { %v503_v59 = vmax.f32 %v433_v57, 0.0  ;;  %v448_v61 = vadd.f32 %v1082_v58, %v967_v47 }
  0xdb   : > { %v442_v62 = vpop.f32.mrf.mxu0 }
  0xdc   : > { %v443_v63 = vadd.f32 %v967_v47, %v442_v62  ;;  %1133 = vmatprep.mubr.f32.mxu1 %v503_v59  ;;  %v506_v2 = vmax.f32 %v448_v61, 0.0 }
  0xdd   : > { %v1085_v0 = vpop.f32.mrf.mxu0  ;;  %1134 = vmatmul.mubr.f32.gmra.mxu1 %v504_v60 }
  0xde   : > { %v505_v1 = vmax.f32 %v443_v63, 0.0  ;;  %v458_v3 = vadd.f32 %v1085_v0, %v967_v47 }
  0xdf   : > { %v452_v4 = vpop.f32.mrf.mxu0 }
  0xe0   : > { %v453_v5 = vadd.f32 %v967_v47, %v452_v4  ;;  %1136 = vmatprep.mubr.f32.mxu1 %v505_v1  ;;  %v508_v8 = vmax.f32 %v458_v3, 0.0 }
  0xe1   : > { %v1088_v6 = vpop.f32.mrf.mxu0  ;;  %1137 = vmatmul.mubr.f32.gmra.mxu1 %v506_v2 }
  0xe2   : > { %v507_v7 = vmax.f32 %v453_v5, 0.0  ;;  %v468_v9 = vadd.f32 %v1088_v6, %v967_v47 }
  0xe3   : > { %v462_v10 = vpop.f32.mrf.mxu0 }
  0xe4   : > { %v463_v11 = vadd.f32 %v967_v47, %v462_v10  ;;  %1139 = vmatprep.mubr.f32.mxu1 %v507_v7  ;;  %v510_v14 = vmax.f32 %v468_v9, 0.0 }
  0xe5   : > { %v1091_v12 = vpop.f32.mrf.mxu0  ;;  %1140 = vmatmul.mubr.f32.gmra.mxu1 %v508_v8 }
  0xe6   : > { %v509_v13 = vmax.f32 %v463_v11, 0.0  ;;  %v478_v15 = vadd.f32 %v1091_v12, %v967_v47 }
  0xe7   : > { %v472_v16 = vpop.f32.mrf.mxu0 }
  0xe8   : > { %v473_v17 = vadd.f32 %v967_v47, %v472_v16  ;;  %1142 = vmatprep.mubr.f32.mxu1 %v509_v13  ;;  %v512_v20 = vmax.f32 %v478_v15, 0.0 }
  0xe9   : > { %v1094_v18 = vpop.f32.mrf.mxu0  ;;  %1143 = vmatmul.mubr.f32.gmra.mxu1 %v510_v14 }
  0xea   : > { %v511_v19 = vmax.f32 %v473_v17, 0.0  ;;  %v488_v21 = vadd.f32 %v1094_v18, %v967_v47 }
  0xeb   : > { %v482_v22 = vpop.f32.mrf.mxu0 }
  0xec   : > { %v483_v23 = vadd.f32 %v967_v47, %v482_v22  ;;  %1145 = vmatprep.mubr.f32.mxu1 %v511_v19  ;;  %v514_v26 = vmax.f32 %v488_v21, 0.0 }
  0xed   : > { %v1097_v24 = vpop.f32.mrf.mxu0  ;;  %1146 = vmatmul.mubr.f32.gmra.mxu1 %v512_v20  ;;  %v1459_v20 = vld [vmem:[%s1525_s6] ss:$0 sm:$0xff] }
  0xee   : > { %v513_v25 = vmax.f32 %v483_v23, 0.0  ;;  %v498_v27 = vadd.f32 %v1097_v24, %v967_v47 }
  0xef   : > { %v492_v28 = vpop.f32.mrf.mxu0 }
  0xf0   : > { %v493_v29 = vadd.f32 %v967_v47, %v492_v28  ;;  %1148 = vmatprep.mubr.f32.mxu1 %v513_v25  ;;  %v516_v31 = vmax.f32 %v498_v27, 0.0 }
  0xf1   : > { %1149 = vmatmul.mubr.f32.gmra.mxu1 %v514_v26 }
  0xf2   : > { %v515_v30 = vmax.f32 %v493_v29, 0.0 }
  0xf4   : > { %1151 = vmatprep.mubr.f32.mxu1 %v515_v30 }
  0xf5   : > { %1152 = vmatmul.mubr.f32.gmra.mxu1 %v516_v31 }
 0x199   : > { %v1132_v36 = vpop.f32.mrf.mxu1 }
 0x19a   : > { %v612_v37 = vadd.f32 %v1132_v36, %v984_v35 }
 0x19b   : > { %v606_v38 = vpop.f32.mrf.mxu1 }
 0x19c   : > { %v607_v39 = vadd.f32 %v984_v35, %v606_v38  ;;  %v686_v42 = vmax.f32 %v612_v37, 0.0 }
 0x19d   : > { %v1135_v40 = vpop.f32.mrf.mxu1 }
 0x19e   : > { %v685_v41 = vmax.f32 %v607_v39, 0.0  ;;  %v622_v43 = vadd.f32 %v1135_v40, %v984_v35 }
 0x19f   : > { %v616_v44 = vpop.f32.mrf.mxu1 }
 0x1a0   : > { %v617_v45 = vadd.f32 %v984_v35, %v616_v44  ;;  %1186 = vmatprep.mubr.f32.mxu0 %v685_v41  ;;  %v688_v48 = vmax.f32 %v622_v43, 0.0 }
 0x1a1   : > { %v1138_v46 = vpop.f32.mrf.mxu1  ;;  %1187 = vmatmul.mubr.f32.vlgmr.msra.gmra.mxu0 %v686_v42 }
 0x1a2   : > { %v687_v47 = vmax.f32 %v617_v45, 0.0  ;;  %v632_v49 = vadd.f32 %v1138_v46, %v984_v35 }
 0x1a3   : > { %v626_v50 = vpop.f32.mrf.mxu1 }
 0x1a4   : > { %v627_v51 = vadd.f32 %v984_v35, %v626_v50  ;;  %1189 = vmatprep.mubr.f32.mxu0 %v687_v47  ;;  %v690_v54 = vmax.f32 %v632_v49, 0.0 }
 0x1a5   : > { %v1141_v52 = vpop.f32.mrf.mxu1  ;;  %1190 = vmatmul.mubr.f32.gmra.mxu0 %v688_v48 }
 0x1a6   : > { %v689_v53 = vmax.f32 %v627_v51, 0.0  ;;  %v642_v55 = vadd.f32 %v1141_v52, %v984_v35 }
 0x1a7   : > { %v636_v56 = vpop.f32.mrf.mxu1 }
 0x1a8   : > { %v637_v57 = vadd.f32 %v984_v35, %v636_v56  ;;  %1192 = vmatprep.mubr.f32.mxu0 %v689_v53  ;;  %v692_v60 = vmax.f32 %v642_v55, 0.0 }
 0x1a9   : > { %v1144_v58 = vpop.f32.mrf.mxu1  ;;  %1193 = vmatmul.mubr.f32.gmra.mxu0 %v690_v54 }
 0x1aa   : > { %v691_v59 = vmax.f32 %v637_v57, 0.0  ;;  %v652_v61 = vadd.f32 %v1144_v58, %v984_v35 }
 0x1ab   : > { %v646_v62 = vpop.f32.mrf.mxu1 }
 0x1ac   : > { %v647_v63 = vadd.f32 %v984_v35, %v646_v62  ;;  %1195 = vmatprep.mubr.f32.mxu0 %v691_v59  ;;  %v694_v2 = vmax.f32 %v652_v61, 0.0 }
 0x1ad   : > { %v1147_v0 = vpop.f32.mrf.mxu1  ;;  %1196 = vmatmul.mubr.f32.gmra.mxu0 %v692_v60 }
 0x1ae   : > { %v693_v1 = vmax.f32 %v647_v63, 0.0  ;;  %v662_v3 = vadd.f32 %v1147_v0, %v984_v35 }
 0x1af   : > { %v656_v4 = vpop.f32.mrf.mxu1 }
 0x1b0   : > { %v657_v5 = vadd.f32 %v984_v35, %v656_v4  ;;  %1198 = vmatprep.mubr.f32.mxu0 %v693_v1  ;;  %v696_v8 = vmax.f32 %v662_v3, 0.0 }
 0x1b1   : > { %v1150_v6 = vpop.f32.mrf.mxu1  ;;  %1199 = vmatmul.mubr.f32.gmra.mxu0 %v694_v2 }
 0x1b2   : > { %v695_v7 = vmax.f32 %v657_v5, 0.0  ;;  %v672_v9 = vadd.f32 %v1150_v6, %v984_v35 }
 0x1b3   : > { %v666_v10 = vpop.f32.mrf.mxu1 }
 0x1b4   : > { %v667_v11 = vadd.f32 %v984_v35, %v666_v10  ;;  %1201 = vmatprep.mubr.f32.mxu0 %v695_v7  ;;  %v698_v14 = vmax.f32 %v672_v9, 0.0 }
 0x1b5   : > { %v1153_v12 = vpop.f32.mrf.mxu1  ;;  %1202 = vmatmul.mubr.f32.gmra.mxu0 %v696_v8 }
 0x1b6   : > { %v697_v13 = vmax.f32 %v667_v11, 0.0  ;;  %v682_v15 = vadd.f32 %v1153_v12, %v984_v35 }
 0x1b7   : > { %v676_v16 = vpop.f32.mrf.mxu1 }
 0x1b8   : > { %v677_v17 = vadd.f32 %v984_v35, %v676_v16  ;;  %1204 = vmatprep.mubr.f32.mxu0 %v697_v13  ;;  %v700_v19 = vmax.f32 %v682_v15, 0.0 }
 0x1b9   : > { %1205 = vmatmul.mubr.f32.gmra.mxu0 %v698_v14 }
 0x1ba   : > { %v699_v18 = vmax.f32 %v677_v17, 0.0 }
 0x1bc   : > { %1207 = vmatprep.mubr.f32.mxu0 %v699_v18 }
 0x1bd   : > { %1208 = vmatmul.mubr.f32.gmra.mxu0 %v700_v19 }
 0x261   : > { %v1188_v21 = vpop.f32.mrf.mxu0 }
 0x262   : > { %v796_v22 = vadd.f32 %v1188_v21, %v1459_v20 }
 0x263   : > { %v790_v23 = vpop.f32.mrf.mxu0 }
 0x264   : > { %1218 = vtanh.f32 %v796_v22  ;;  %v791_v24 = vadd.f32 %v1459_v20, %v790_v23 }
 0x265   : > { %v1191_v25 = vpop.f32.mrf.mxu0 }
 0x266   : > { %1220 = vtanh.f32 %v791_v24  ;;  %v806_v26 = vadd.f32 %v1191_v25, %v1459_v20 }
 0x267   : > { %v800_v27 = vpop.f32.mrf.mxu0 }
 0x268   : > { %1222 = vtanh.f32 %v806_v26  ;;  %v801_v28 = vadd.f32 %v1459_v20, %v800_v27 }
 0x269   : > { %v1194_v29 = vpop.f32.mrf.mxu0 }
 0x26a   : > { %1224 = vtanh.f32 %v801_v28  ;;  %v816_v30 = vadd.f32 %v1194_v29, %v1459_v20 }
 0x26b   : > { %v810_v31 = vpop.f32.mrf.mxu0 }
 0x26c   : > { %1226 = vtanh.f32 %v816_v30  ;;  %v811_v32 = vadd.f32 %v1459_v20, %v810_v31 }
 0x26d   : > { %v1197_v33 = vpop.f32.mrf.mxu0 }
 0x26e   : > { %1228 = vtanh.f32 %v811_v32  ;;  %v826_v34 = vadd.f32 %v1197_v33, %v1459_v20 }
 0x26f   : > { %v820_v35 = vpop.f32.mrf.mxu0 }
 0x270   : > { %1230 = vtanh.f32 %v826_v34  ;;  %v821_v36 = vadd.f32 %v1459_v20, %v820_v35 }
 0x271   : > { %v1219_v37 = vpop.eup %1218  ;;  %v1200_v38 = vpop.f32.mrf.mxu0 }
 0x272   : > { %887 = vst.msk [vmem:[%s1473_s25 + $0x8] sm:$0xff] %vm885_vm1, %v1219_v37  ;;  %1232 = vtanh.f32 %v821_v36  ;;  %v836_v39 = vadd.f32 %v1200_v38, %v1459_v20 }
 0x273   : > { %v1221_v40 = vpop.eup %1220  ;;  %v830_v41 = vpop.f32.mrf.mxu0 }
 0x274   : > { %886 = vst.msk [vmem:[%s1473_s25] sm:$0xff] %vm885_vm1, %v1221_v40  ;;  %1234 = vtanh.f32 %v836_v39  ;;  %v831_v42 = vadd.f32 %v1459_v20, %v830_v41 }
 0x275   : > { %v1223_v43 = vpop.eup %1222  ;;  %v1203_v44 = vpop.f32.mrf.mxu0 }
 0x276   : > { %889 = vst.msk [vmem:[%s1473_s25 + $0x18] sm:$0xff] %vm885_vm1, %v1223_v43  ;;  %1236 = vtanh.f32 %v831_v42  ;;  %v846_v45 = vadd.f32 %v1203_v44, %v1459_v20 }
 0x277   : > { %v1225_v46 = vpop.eup %1224  ;;  %v840_v47 = vpop.f32.mrf.mxu0 }
 0x278   : > { %888 = vst.msk [vmem:[%s1473_s25 + $0x10] sm:$0xff] %vm885_vm1, %v1225_v46  ;;  %1238 = vtanh.f32 %v846_v45  ;;  %v841_v48 = vadd.f32 %v1459_v20, %v840_v47 }
 0x279   : > { %v1227_v49 = vpop.eup %1226  ;;  %v1206_v50 = vpop.f32.mrf.mxu0 }
 0x27a   : > { %891 = vst.msk [vmem:[%s1473_s25 + $0x28] sm:$0xff] %vm885_vm1, %v1227_v49  ;;  %1240 = vtanh.f32 %v841_v48  ;;  %v856_v51 = vadd.f32 %v1206_v50, %v1459_v20 }
 0x27b   : > { %v1229_v52 = vpop.eup %1228  ;;  %v850_v53 = vpop.f32.mrf.mxu0 }
 0x27c   : > { %890 = vst.msk [vmem:[%s1473_s25 + $0x20] sm:$0xff] %vm885_vm1, %v1229_v52  ;;  %1242 = vtanh.f32 %v856_v51  ;;  %v851_v54 = vadd.f32 %v1459_v20, %v850_v53 }
 0x27d   : > { %v1231_v55 = vpop.eup %1230  ;;  %v1209_v56 = vpop.f32.mrf.mxu0 }
 0x27e   : > { %893 = vst.msk [vmem:[%s1473_s25 + $0x38] sm:$0xff] %vm885_vm1, %v1231_v55  ;;  %1244 = vtanh.f32 %v851_v54  ;;  %v866_v57 = vadd.f32 %v1209_v56, %v1459_v20 }
 0x27f   : > { %v1233_v58 = vpop.eup %1232  ;;  %v860_v59 = vpop.f32.mrf.mxu0 }
 0x280   : > { %892 = vst.msk [vmem:[%s1473_s25 + $0x30] sm:$0xff] %vm885_vm1, %v1233_v58  ;;  %1246 = vtanh.f32 %v866_v57  ;;  %v861_v60 = vadd.f32 %v1459_v20, %v860_v59 }
 0x281   : > { %v1235_v61 = vpop.eup %1234 }
 0x282   : > { %895 = vst.msk [vmem:[%s1473_s25 + $0x48] sm:$0xff] %vm885_vm1, %v1235_v61  ;;  %1248 = vtanh.f32 %v861_v60 }
 0x283   : > { %v1237_v62 = vpop.eup %1236 }
 0x284   : > { %894 = vst.msk [vmem:[%s1473_s25 + $0x40] sm:$0xff] %vm885_vm1, %v1237_v62 }
 0x285   : > { %v1239_v63 = vpop.eup %1238 }
 0x286   : > { %897 = vst.msk [vmem:[%s1473_s25 + $0x58] sm:$0xff] %vm885_vm1, %v1239_v63 }
 0x287   : > { %v1241_v0 = vpop.eup %1240 }
 0x288   : > { %896 = vst.msk [vmem:[%s1473_s25 + $0x50] sm:$0xff] %vm885_vm1, %v1241_v0 }
 0x289   : > { %v1243_v1 = vpop.eup %1242 }
 0x28a   : > { %899 = vst.msk [vmem:[%s1473_s25 + $0x68] sm:$0xff] %vm885_vm1, %v1243_v1 }
 0x28b   : > { %v1245_v2 = vpop.eup %1244 }
 0x28c   : > { %898 = vst.msk [vmem:[%s1473_s25 + $0x60] sm:$0xff] %vm885_vm1, %v1245_v2 }
 0x28d   : > { %v1247_v3 = vpop.eup %1246 }
 0x28e   : > { %901 = vst.msk [vmem:[%s1473_s25 + $0x78] sm:$0xff] %vm885_vm1, %v1247_v3 }
 0x28f   : > { %v1249_v4 = vpop.eup %1248 }
 0x290   : > { %900 = vst.msk [vmem:[%s1473_s25 + $0x70] sm:$0xff] %vm885_vm1, %v1249_v4 }
 0x291 PF: > { %s17_s24 = sadd.s32 1, %s1256_s24  }
 0x292   : > { %p14_p4 = scmp.ge.s32.totalorder %s17_s24, 4  }
 0x294   :  { %16 = sbr.rel (!%p14_p4) target bundleno = 1 (0x1), region = 78 }

</bundles_post_ra>
